<compile_context>
chip_gen: v6e
topology: v6e:2x2x1
jax: 0.10.0
libtpu: 0.0.40
codegen_flags: <defaults>
</compile_context>

<pallas_src>
import functools

import jax
import jax.numpy as jnp
import numpy as np
from jax.experimental import pallas as pl
from jax.experimental.pallas import tpu as pltpu

_EPS = 1e-5  # nn.BatchNorm2d default eps


def _tap_masks(h, w):
    """Per-tap {0,1} masks over the flattened H*W pixel axis.

    mask[t, h_out*W + w_out] = 1 iff the tap's source pixel (h_out+dy, w_out+dx)
    lies inside the image (t enumerates (dy, dx) in row-major order)."""
    m = np.zeros((9, h, w), np.float32)
    t = 0
    for dy in (-1, 0, 1):
        for dx in (-1, 0, 1):
            m[t, max(0, -dy):h - max(0, dy), max(0, -dx):w - max(0, dx)] = 1.0
            t += 1
    return jnp.asarray(m.reshape(9, h * w))


def _round_up(c, m=8):
    return ((c + m - 1) // m) * m


def _pick_batch_tile(n, tb_target=8, min_steps=16):
    """Largest divisor of n <= tb_target, preferring enough grid steps for pipelining
    (and for the two v7x TensorCores) when the batch is large."""
    divs = [d for d in range(1, min(tb_target, n) + 1) if n % d == 0]
    good = [d for d in divs if n // d >= min_steps]
    return max(good) if good else max(divs)


def _stack_conv_weights(w_oihw, cin_p, cout_p, out_scale=None):
    """OIHW (Cout,Cin,3,3) -> (cout_p, 9*cin_p) with columns ordered (tap, ci),
    tap order matching the kernel's (dy, dx) row-major loop.  Optionally folds a
    per-output-channel scale (BN2) into the weights.  Padded rows/cols are zero."""
    cout, cin = w_oihw.shape[:2]
    w = w_oihw.astype(jnp.float32)
    if out_scale is not None:
        w = w * out_scale[:, None, None, None]
    w = jnp.transpose(w, (0, 2, 3, 1))                                   # (Cout,ky,kx,Cin)
    w = jnp.pad(w, ((0, cout_p - cout), (0, 0), (0, 0), (0, cin_p - cin)))
    return w.reshape(cout_p, 9 * cin_p)


# --------------------------- fused block kernel ------------------------------
def _preact_block_kernel(x_ref, s1_ref, b1_ref, w1_ref, b2_ref, w2_ref, m_ref,
                         o_ref, *, width, first):
    # Per grid step = TB images, NCHW flattened so lanes carry (image, h, w):
    #   x_ref : (1, Cin_p, L)        L = TB*H*W
    #   s1/b1 : (Cin_p, 1)           folded BN1 scale / shift
    #   w1_ref: (Cmid_p, 9*Cin_p)    stacked taps, BN2 scale folded in   (resident)
    #   b2_ref: (Cmid_p, 1)          folded BN2 shift                    (resident)
    #   w2_ref: (Cout_p, 9*Cmid_p)                                       (resident)
    #   m_ref : (9, L)               per-tap border masks (MXU dtype)    (resident)
    L = x_ref.shape[-1]
    mxu_dtype = w1_ref.dtype

    x = x_ref[0].astype(jnp.float32)                          # (Cin_p, L)
    # ---- BN1 (inference affine) + ReLU, fused on the VPU ---------------------
    y = jnp.maximum(x * s1_ref[...] + b1_ref[...], 0.0)
    residual = y if first else x                              # static python bool
    masks = m_ref[...]                                        # (9, L)

    def conv3x3(src_f32, w_ref):
        # 3x3 / stride-1 / SAME conv on the (C, L) slab: 8 static lane rolls (XLU)
        # + precomputed border masks (VPU), stacked along K into ONE
        # (Cout, 9*C) x (9*C, L) MXU matmul with f32 accumulation.
        src = src_f32.astype(mxu_dtype)
        taps = []
        t = 0
        for dy in (-1, 0, 1):
            for dx in (-1, 0, 1):
                shift = dy * width + dx                       # static int
                if shift == 0:
                    taps.append(src)                          # center tap: mask == 1
                else:
                    rolled = pltpu.roll(src, (-shift) % L, axis=1)
                    taps.append(rolled * masks[t:t + 1, :])   # zero out-of-image pixels
                t += 1
        stacked = jnp.concatenate(taps, axis=0)               # (9*C, L)
        return jnp.dot(w_ref[...], stacked, preferred_element_type=jnp.float32)

    # ---- conv1 (+ folded BN2 affine) + ReLU ----------------------------------
    z = jnp.maximum(conv3x3(y, w1_ref) + b2_ref[...], 0.0)    # (Cmid_p, L)
    # ---- conv2 + residual add -------------------------------------------------
    out = conv3x3(z, w2_ref) + residual                       # (Cout_p, L)
    o_ref[0] = out.astype(o_ref.dtype)


# ------------------------------ PreActBlock ----------------------------------
def preact_block_forward(x_nchw, p, *, first=False, prune=False, tb_target=8):
    if prune:
        return x_nchw
    # TODO(synk): `shortcut` submodule and stride>1 path are not instantiated here
    #             (shortcut=None -> identity residual, stride=1, inplanes == planes).
    # TODO(synk): custom conv()'s p_init / fp (pruning / fixed-point) internals are
    #             not defined in the reference; implemented as standard bias-free 3x3.
    n, cin, h, w = x_nchw.shape
    cmid = p["w1"].shape[0]
    cout = p["w2"].shape[0]
    hw = h * w
    f32 = jnp.float32

    # Sublane-friendly channel padding (fills all 8 sublanes per f32 vreg).
    cin_p, cmid_p, cout_p = _round_up(cin), _round_up(cmid), _round_up(cout)

    # Batch folding: TB images share one (C, TB*HW) lane slab per grid step.
    tb = _pick_batch_tile(n, tb_target=tb_target)
    n_tiles = n // tb
    L = tb * hw

    # MXU / resident-constant dtype: bf16 when the model runs bf16 (v6e/v7x bf16 VALU,
    # half the resident VMEM on v7x), f32 otherwise (v5e has no bf16 VPU; exact demo).
    mxu_dtype = jnp.bfloat16 if x_nchw.dtype == jnp.bfloat16 else jnp.float32

    # Folded BN affines (inference / running stats).
    s1 = (p["bn1_gamma"] * jax.lax.rsqrt(p["bn1_var"] + _EPS)).astype(f32)
    b1 = (p["bn1_beta"] - p["bn1_mean"] * s1).astype(f32)
    s2 = (p["bn2_gamma"] * jax.lax.rsqrt(p["bn2_var"] + _EPS)).astype(f32)
    b2 = (p["bn2_beta"] - p["bn2_mean"] * s2).astype(f32)

    # Stacked, BN2-folded, channel-padded, lane-dense (Cout, 9*Cin) weights.
    w1_stk = _stack_conv_weights(p["w1"], cin_p, cmid_p, out_scale=s2).astype(mxu_dtype)
    w2_stk = _stack_conv_weights(p["w2"], cmid_p, cout_p).astype(mxu_dtype)

    s1_p = jnp.pad(s1, (0, cin_p - cin)).reshape(cin_p, 1)
    b1_p = jnp.pad(b1, (0, cin_p - cin)).reshape(cin_p, 1)
    b2_p = jnp.pad(b2, (0, cmid_p - cmid)).reshape(cmid_p, 1)

    # Per-tap border masks, tiled over the TB images in a lane slab.
    masks = jnp.tile(_tap_masks(h, w), (1, tb)).astype(mxu_dtype)          # (9, L)

    # x -> (n_tiles, Cin_p, TB*HW): lane axis carries (image-in-tile, h, w).
    x_t = x_nchw.reshape(n_tiles, tb, cin, hw)
    x_t = jnp.pad(x_t, ((0, 0), (0, 0), (0, cin_p - cin), (0, 0)))
    x_t = jnp.transpose(x_t, (0, 2, 1, 3)).reshape(n_tiles, cin_p, L)

    # Per-generation VMEM budget derived from the actual footprint (double-buffered
    # blocks + resident constants + in-kernel temporaries), clamped to 64 MiB (v7x cap).
    itm = jnp.dtype(x_nchw.dtype).itemsize
    mit = jnp.dtype(mxu_dtype).itemsize
    cmax = max(cin_p, cmid_p, cout_p)
    vmem_need = (
        2 * cin_p * L * itm                        # x block (double-buffered)
        + 2 * cout_p * L * itm                     # out block
        + 2 * (cmid_p * 9 * cin_p + cout_p * 9 * cmid_p) * mit  # resident weights
        + 2 * 9 * L * mit                          # resident masks
        + (9 * cmax * L) * mit                     # stacked conv operand
        + 4 * cmax * L * 4                         # y / z / acc / residual f32 slabs
        + (4 << 20)                                # headroom
    )
    vmem_limit = int(min(max(vmem_need, 16 << 20), 64 << 20))

    kernel = functools.partial(_preact_block_kernel, width=w, first=first)
    out = pl.pallas_call(
        kernel,
        grid=(n_tiles,),                                   # batch tiles, pipelined
        in_specs=[
            pl.BlockSpec((1, cin_p, L), lambda i: (i, 0, 0)),        # x tile
            pl.BlockSpec((cin_p, 1), lambda i: (0, 0)),              # BN1 scale  (resident)
            pl.BlockSpec((cin_p, 1), lambda i: (0, 0)),              # BN1 shift  (resident)
            pl.BlockSpec((cmid_p, 9 * cin_p), lambda i: (0, 0)),     # w1 stacked (resident)
            pl.BlockSpec((cmid_p, 1), lambda i: (0, 0)),             # BN2 bias   (resident)
            pl.BlockSpec((cout_p, 9 * cmid_p), lambda i: (0, 0)),    # w2 stacked (resident)
            pl.BlockSpec((9, L), lambda i: (0, 0)),                  # border masks (resident)
        ],
        out_specs=pl.BlockSpec((1, cout_p, L), lambda i: (i, 0, 0)),
        out_shape=jax.ShapeDtypeStruct((n_tiles, cout_p, L), x_nchw.dtype),
        compiler_params=pltpu.CompilerParams(
            dimension_semantics=("parallel",),             # batch-tile axis feeds both v7x TCs
            vmem_limit_bytes=vmem_limit,
        ),
    )(x_t, s1_p, b1_p, w1_stk, b2_p, w2_stk, masks)

    out = out.reshape(n_tiles, cout_p, tb, hw)
    out = jnp.transpose(out, (0, 2, 1, 3)).reshape(n, cout_p, h, w)
    return out[:, :cout]


# ----------------------------- pure-JAX reference ----------------------------
def _reference(x_nchw, p, first=False):
    x = jnp.transpose(x_nchw, (0, 2, 3, 1))

    def bn_relu_ref(v, g, b, m, var):
        return jnp.maximum((v - m) * (g * jax.lax.rsqrt(var + _EPS)) + b, 0.0)

    def conv_ref(v, w_oihw):
        wt = jnp.transpose(w_oihw, (2, 3, 1, 0))
        return jax.lax.conv_general_dilated(
            v, wt, (1, 1), "SAME", dimension_numbers=("NHWC", "HWIO", "NHWC"))

    residual = x
    out = bn_relu_ref(x, p["bn1_gamma"], p["bn1_beta"], p["bn1_mean"], p["bn1_var"])
    if first:
        residual = out
    out = conv_ref(out, p["w1"])
    out = bn_relu_ref(out, p["bn2_gamma"], p["bn2_beta"], p["bn2_mean"], p["bn2_var"])
    out = conv_ref(out, p["w2"]) + residual
    return jnp.transpose(out, (0, 3, 1, 2))


if __name__ == "__main__":
    N, C, H, W = 2, 4, 16, 16          # batch=2, inplanes=planes=4, spatial=16
    inplanes = planes = C

    key = jax.random.PRNGKey(0)
    ks = jax.random.split(key, 12)
    x = jax.random.normal(ks[0], (N, C, H, W), jnp.float32)

    params = {
        "bn1_gamma": 1.0 + 0.1 * jax.random.normal(ks[1], (inplanes,), jnp.float32),
        "bn1_beta": 0.1 * jax.random.normal(ks[2], (inplanes,), jnp.float32),
        "bn1_mean": 0.1 * jax.random.normal(ks[3], (inplanes,), jnp.float32),
        "bn1_var": 1.0 + 0.1 * jnp.abs(jax.random.normal(ks[4], (inplanes,), jnp.float32)),
        "w1": 0.1 * jax.random.normal(ks[5], (planes, inplanes, 3, 3), jnp.float32),  # OIHW
        "bn2_gamma": 1.0 + 0.1 * jax.random.normal(ks[6], (planes,), jnp.float32),
        "bn2_beta": 0.1 * jax.random.normal(ks[7], (planes,), jnp.float32),
        "bn2_mean": 0.1 * jax.random.normal(ks[8], (planes,), jnp.float32),
        "bn2_var": 1.0 + 0.1 * jnp.abs(jax.random.normal(ks[9], (planes,), jnp.float32)),
        "w2": 0.1 * jax.random.normal(ks[10], (planes, planes, 3, 3), jnp.float32),   # OIHW
    }

    for first in (False, True):
        y = jax.block_until_ready(preact_block_forward(x, params, first=first))
        y_ref = jax.block_until_ready(_reference(x, params, first=first))
        assert y.shape == (N, planes, H, W)
        np.testing.assert_allclose(np.asarray(y), np.asarray(y_ref), rtol=1e-4, atol=1e-4)

    # prune path: identity
    np.testing.assert_allclose(
        np.asarray(preact_block_forward(x, params, prune=True)), np.asarray(x))

    print("KERNEL_OK")
</pallas_src>

<mosaic_0001>
module attributes {stable_mosaic.version = 11 : i64} {
  func.func @_preact_block_kernel(%arg0: i32, %arg1: memref<1x8x512xf32, #tpu.memory_space<vmem>>, %arg2: memref<8x1xf32, #tpu.memory_space<vmem>>, %arg3: memref<8x1xf32, #tpu.memory_space<vmem>>, %arg4: memref<8x72xf32, #tpu.memory_space<vmem>>, %arg5: memref<8x1xf32, #tpu.memory_space<vmem>>, %arg6: memref<8x72xf32, #tpu.memory_space<vmem>>, %arg7: memref<9x512xf32, #tpu.memory_space<vmem>>, %arg8: memref<1x8x512xf32, #tpu.memory_space<vmem>>) attributes {dimension_semantics = [#tpu.dimension_semantics<parallel>], iteration_bounds = array<i64: 1>, scalar_prefetch = 0 : i64, scratch_operands = 0 : i64, tpu.core_type = #tpu.core_type<tc>, window_params = [{transform_indices = @transform_0, window_bounds = array<i64: 1, 8, 512>}, {pipeline_mode = #tpu.pipeline_mode<synchronous>, transform_indices = @transform_1, window_bounds = array<i64: 8, 1>}, {pipeline_mode = #tpu.pipeline_mode<synchronous>, transform_indices = @transform_2, window_bounds = array<i64: 8, 1>}, {pipeline_mode = #tpu.pipeline_mode<synchronous>, transform_indices = @transform_3, window_bounds = array<i64: 8, 72>}, {pipeline_mode = #tpu.pipeline_mode<synchronous>, transform_indices = @transform_4, window_bounds = array<i64: 8, 1>}, {pipeline_mode = #tpu.pipeline_mode<synchronous>, transform_indices = @transform_5, window_bounds = array<i64: 8, 72>}, {pipeline_mode = #tpu.pipeline_mode<synchronous>, transform_indices = @transform_6, window_bounds = array<i64: 9, 512>}, {transform_indices = @transform_7, window_bounds = array<i64: 1, 8, 512>}]} {
    %c0 = arith.constant 0 : index
    %c0_0 = arith.constant 0 : index
    %c0_1 = arith.constant 0 : index
    %0 = vector.load %arg1[%c0, %c0_0, %c0_1] : memref<1x8x512xf32, #tpu.memory_space<vmem>>, vector<1x8x512xf32>
    %1 = vector.shape_cast %0 : vector<1x8x512xf32> to vector<8x512xf32>
    %c0_2 = arith.constant 0 : index
    %c0_3 = arith.constant 0 : index
    %2 = vector.load %arg2[%c0_2, %c0_3] : memref<8x1xf32, #tpu.memory_space<vmem>>, vector<8x1xf32>
    %3 = vector.broadcast %2 : vector<8x1xf32> to vector<8x512xf32>
    %4 = arith.mulf %1, %3 : vector<8x512xf32>
    %c0_4 = arith.constant 0 : index
    %c0_5 = arith.constant 0 : index
    %5 = vector.load %arg3[%c0_4, %c0_5] : memref<8x1xf32, #tpu.memory_space<vmem>>, vector<8x1xf32>
    %6 = vector.broadcast %5 : vector<8x1xf32> to vector<8x512xf32>
    %7 = arith.addf %4, %6 : vector<8x512xf32>
    %cst = arith.constant 0.000000e+00 : f32
    %8 = vector.broadcast %cst : f32 to vector<8x512xf32>
    %9 = arith.maximumf %7, %8 : vector<8x512xf32>
    %c0_6 = arith.constant 0 : index
    %c0_7 = arith.constant 0 : index
    %10 = vector.load %arg7[%c0_6, %c0_7] : memref<9x512xf32, #tpu.memory_space<vmem>>, vector<9x512xf32>
    %c17_i32 = arith.constant 17 : i32
    %11 = tpu.dynamic_rotate %9 by %c17_i32 dim 1 : vector<8x512xf32>, i32 -> vector<8x512xf32>
    %12 = vector.extract_strided_slice %10 {offsets = [0, 0], sizes = [1, 512], strides = [1, 1]} : vector<9x512xf32> to vector<1x512xf32>
    %13 = vector.broadcast %12 : vector<1x512xf32> to vector<8x512xf32>
    %14 = arith.mulf %11, %13 : vector<8x512xf32>
    %c16_i32 = arith.constant 16 : i32
    %15 = tpu.dynamic_rotate %9 by %c16_i32 dim 1 : vector<8x512xf32>, i32 -> vector<8x512xf32>
    %16 = vector.extract_strided_slice %10 {offsets = [1, 0], sizes = [1, 512], strides = [1, 1]} : vector<9x512xf32> to vector<1x512xf32>
    %17 = vector.broadcast %16 : vector<1x512xf32> to vector<8x512xf32>
    %18 = arith.mulf %15, %17 : vector<8x512xf32>
    %c15_i32 = arith.constant 15 : i32
    %19 = tpu.dynamic_rotate %9 by %c15_i32 dim 1 : vector<8x512xf32>, i32 -> vector<8x512xf32>
    %20 = vector.extract_strided_slice %10 {offsets = [2, 0], sizes = [1, 512], strides = [1, 1]} : vector<9x512xf32> to vector<1x512xf32>
    %21 = vector.broadcast %20 : vector<1x512xf32> to vector<8x512xf32>
    %22 = arith.mulf %19, %21 : vector<8x512xf32>
    %c1_i32 = arith.constant 1 : i32
    %23 = tpu.dynamic_rotate %9 by %c1_i32 dim 1 : vector<8x512xf32>, i32 -> vector<8x512xf32>
    %24 = vector.extract_strided_slice %10 {offsets = [3, 0], sizes = [1, 512], strides = [1, 1]} : vector<9x512xf32> to vector<1x512xf32>
    %25 = vector.broadcast %24 : vector<1x512xf32> to vector<8x512xf32>
    %26 = arith.mulf %23, %25 : vector<8x512xf32>
    %c511_i32 = arith.constant 511 : i32
    %27 = tpu.dynamic_rotate %9 by %c511_i32 dim 1 : vector<8x512xf32>, i32 -> vector<8x512xf32>
    %28 = vector.extract_strided_slice %10 {offsets = [5, 0], sizes = [1, 512], strides = [1, 1]} : vector<9x512xf32> to vector<1x512xf32>
    %29 = vector.broadcast %28 : vector<1x512xf32> to vector<8x512xf32>
    %30 = arith.mulf %27, %29 : vector<8x512xf32>
    %c497_i32 = arith.constant 497 : i32
    %31 = tpu.dynamic_rotate %9 by %c497_i32 dim 1 : vector<8x512xf32>, i32 -> vector<8x512xf32>
    %32 = vector.extract_strided_slice %10 {offsets = [6, 0], sizes = [1, 512], strides = [1, 1]} : vector<9x512xf32> to vector<1x512xf32>
    %33 = vector.broadcast %32 : vector<1x512xf32> to vector<8x512xf32>
    %34 = arith.mulf %31, %33 : vector<8x512xf32>
    %c496_i32 = arith.constant 496 : i32
    %35 = tpu.dynamic_rotate %9 by %c496_i32 dim 1 : vector<8x512xf32>, i32 -> vector<8x512xf32>
    %36 = vector.extract_strided_slice %10 {offsets = [7, 0], sizes = [1, 512], strides = [1, 1]} : vector<9x512xf32> to vector<1x512xf32>
    %37 = vector.broadcast %36 : vector<1x512xf32> to vector<8x512xf32>
    %38 = arith.mulf %35, %37 : vector<8x512xf32>
    %c495_i32 = arith.constant 495 : i32
    %39 = tpu.dynamic_rotate %9 by %c495_i32 dim 1 : vector<8x512xf32>, i32 -> vector<8x512xf32>
    %40 = vector.extract_strided_slice %10 {offsets = [8, 0], sizes = [1, 512], strides = [1, 1]} : vector<9x512xf32> to vector<1x512xf32>
    %41 = vector.broadcast %40 : vector<1x512xf32> to vector<8x512xf32>
    %42 = arith.mulf %39, %41 : vector<8x512xf32>
    %43 = tpu.concatenate %14, %18, %22, %26, %9, %30, %34, %38, %42 in 0 : vector<8x512xf32>, vector<8x512xf32>, vector<8x512xf32>, vector<8x512xf32>, vector<8x512xf32>, vector<8x512xf32>, vector<8x512xf32>, vector<8x512xf32>, vector<8x512xf32> -> vector<72x512xf32>
    %c0_8 = arith.constant 0 : index
    %c0_9 = arith.constant 0 : index
    %44 = vector.load %arg4[%c0_8, %c0_9] : memref<8x72xf32, #tpu.memory_space<vmem>>, vector<8x72xf32>
    %cst_10 = arith.constant dense<0.000000e+00> : vector<8x512xf32>
    %45 = tpu.matmul %44, %43, %cst_10 {dimension_numbers = #tpu.dot_dimension_numbers<[1], [0], [0], [1], [0, 0, 1, 1], [], []>} : vector<8x72xf32>, vector<72x512xf32>, vector<8x512xf32> -> vector<8x512xf32>
    %c0_11 = arith.constant 0 : index
    %c0_12 = arith.constant 0 : index
    %46 = vector.load %arg5[%c0_11, %c0_12] : memref<8x1xf32, #tpu.memory_space<vmem>>, vector<8x1xf32>
    %47 = vector.broadcast %46 : vector<8x1xf32> to vector<8x512xf32>
    %48 = arith.addf %45, %47 : vector<8x512xf32>
    %cst_13 = arith.constant 0.000000e+00 : f32
    %49 = vector.broadcast %cst_13 : f32 to vector<8x512xf32>
    %50 = arith.maximumf %48, %49 : vector<8x512xf32>
    %c17_i32_14 = arith.constant 17 : i32
    %51 = tpu.dynamic_rotate %50 by %c17_i32_14 dim 1 : vector<8x512xf32>, i32 -> vector<8x512xf32>
    %52 = vector.extract_strided_slice %10 {offsets = [0, 0], sizes = [1, 512], strides = [1, 1]} : vector<9x512xf32> to vector<1x512xf32>
    %53 = vector.broadcast %52 : vector<1x512xf32> to vector<8x512xf32>
    %54 = arith.mulf %51, %53 : vector<8x512xf32>
    %c16_i32_15 = arith.constant 16 : i32
    %55 = tpu.dynamic_rotate %50 by %c16_i32_15 dim 1 : vector<8x512xf32>, i32 -> vector<8x512xf32>
    %56 = vector.extract_strided_slice %10 {offsets = [1, 0], sizes = [1, 512], strides = [1, 1]} : vector<9x512xf32> to vector<1x512xf32>
    %57 = vector.broadcast %56 : vector<1x512xf32> to vector<8x512xf32>
    %58 = arith.mulf %55, %57 : vector<8x512xf32>
    %c15_i32_16 = arith.constant 15 : i32
    %59 = tpu.dynamic_rotate %50 by %c15_i32_16 dim 1 : vector<8x512xf32>, i32 -> vector<8x512xf32>
    %60 = vector.extract_strided_slice %10 {offsets = [2, 0], sizes = [1, 512], strides = [1, 1]} : vector<9x512xf32> to vector<1x512xf32>
    %61 = vector.broadcast %60 : vector<1x512xf32> to vector<8x512xf32>
    %62 = arith.mulf %59, %61 : vector<8x512xf32>
    %c1_i32_17 = arith.constant 1 : i32
    %63 = tpu.dynamic_rotate %50 by %c1_i32_17 dim 1 : vector<8x512xf32>, i32 -> vector<8x512xf32>
    %64 = vector.extract_strided_slice %10 {offsets = [3, 0], sizes = [1, 512], strides = [1, 1]} : vector<9x512xf32> to vector<1x512xf32>
    %65 = vector.broadcast %64 : vector<1x512xf32> to vector<8x512xf32>
    %66 = arith.mulf %63, %65 : vector<8x512xf32>
    %c511_i32_18 = arith.constant 511 : i32
    %67 = tpu.dynamic_rotate %50 by %c511_i32_18 dim 1 : vector<8x512xf32>, i32 -> vector<8x512xf32>
    %68 = vector.extract_strided_slice %10 {offsets = [5, 0], sizes = [1, 512], strides = [1, 1]} : vector<9x512xf32> to vector<1x512xf32>
    %69 = vector.broadcast %68 : vector<1x512xf32> to vector<8x512xf32>
    %70 = arith.mulf %67, %69 : vector<8x512xf32>
    %c497_i32_19 = arith.constant 497 : i32
    %71 = tpu.dynamic_rotate %50 by %c497_i32_19 dim 1 : vector<8x512xf32>, i32 -> vector<8x512xf32>
    %72 = vector.extract_strided_slice %10 {offsets = [6, 0], sizes = [1, 512], strides = [1, 1]} : vector<9x512xf32> to vector<1x512xf32>
    %73 = vector.broadcast %72 : vector<1x512xf32> to vector<8x512xf32>
    %74 = arith.mulf %71, %73 : vector<8x512xf32>
    %c496_i32_20 = arith.constant 496 : i32
    %75 = tpu.dynamic_rotate %50 by %c496_i32_20 dim 1 : vector<8x512xf32>, i32 -> vector<8x512xf32>
    %76 = vector.extract_strided_slice %10 {offsets = [7, 0], sizes = [1, 512], strides = [1, 1]} : vector<9x512xf32> to vector<1x512xf32>
    %77 = vector.broadcast %76 : vector<1x512xf32> to vector<8x512xf32>
    %78 = arith.mulf %75, %77 : vector<8x512xf32>
    %c495_i32_21 = arith.constant 495 : i32
    %79 = tpu.dynamic_rotate %50 by %c495_i32_21 dim 1 : vector<8x512xf32>, i32 -> vector<8x512xf32>
    %80 = vector.extract_strided_slice %10 {offsets = [8, 0], sizes = [1, 512], strides = [1, 1]} : vector<9x512xf32> to vector<1x512xf32>
    %81 = vector.broadcast %80 : vector<1x512xf32> to vector<8x512xf32>
    %82 = arith.mulf %79, %81 : vector<8x512xf32>
    %83 = tpu.concatenate %54, %58, %62, %66, %50, %70, %74, %78, %82 in 0 : vector<8x512xf32>, vector<8x512xf32>, vector<8x512xf32>, vector<8x512xf32>, vector<8x512xf32>, vector<8x512xf32>, vector<8x512xf32>, vector<8x512xf32>, vector<8x512xf32> -> vector<72x512xf32>
    %c0_22 = arith.constant 0 : index
    %c0_23 = arith.constant 0 : index
    %84 = vector.load %arg6[%c0_22, %c0_23] : memref<8x72xf32, #tpu.memory_space<vmem>>, vector<8x72xf32>
    %cst_24 = arith.constant dense<0.000000e+00> : vector<8x512xf32>
    %85 = tpu.matmul %84, %83, %cst_24 {dimension_numbers = #tpu.dot_dimension_numbers<[1], [0], [0], [1], [0, 0, 1, 1], [], []>} : vector<8x72xf32>, vector<72x512xf32>, vector<8x512xf32> -> vector<8x512xf32>
    %86 = arith.addf %85, %1 : vector<8x512xf32>
    %c0_25 = arith.constant 0 : index
    %c0_26 = arith.constant 0 : index
    %c0_27 = arith.constant 0 : index
    %87 = vector.load %arg8[%c0_25, %c0_26, %c0_27] : memref<1x8x512xf32, #tpu.memory_space<vmem>>, vector<1x8x512xf32>
    %88 = vector.shape_cast %87 : vector<1x8x512xf32> to vector<8x512xf32>
    %89 = vector.shape_cast %86 : vector<8x512xf32> to vector<1x8x512xf32>
    tpu.vector_store %arg8[%c0_25, %c0_26, %c0_27], %89 {strides = array<i32>} : memref<1x8x512xf32, #tpu.memory_space<vmem>>, vector<1x8x512xf32>,
    return
  }
  func.func @transform_0(%arg0: i32) -> (i32, i32, i32) {
    %c0_i32 = arith.constant 0 : i32
    %c0_i32_0 = arith.constant 0 : i32
    %c0_i32_1 = arith.constant 0 : i32
    return %arg0, %c0_i32, %c0_i32_0 : i32, i32, i32
  }
  func.func @transform_1(%arg0: i32) -> (i32, i32) {
    %c0_i32 = arith.constant 0 : i32
    %c0_i32_0 = arith.constant 0 : i32
    %c0_i32_1 = arith.constant 0 : i32
    return %c0_i32, %c0_i32_0 : i32, i32
  }
  func.func @transform_2(%arg0: i32) -> (i32, i32) {
    %c0_i32 = arith.constant 0 : i32
    %c0_i32_0 = arith.constant 0 : i32
    %c0_i32_1 = arith.constant 0 : i32
    return %c0_i32, %c0_i32_0 : i32, i32
  }
  func.func @transform_3(%arg0: i32) -> (i32, i32) {
    %c0_i32 = arith.constant 0 : i32
    %c0_i32_0 = arith.constant 0 : i32
    %c0_i32_1 = arith.constant 0 : i32
    return %c0_i32, %c0_i32_0 : i32, i32
  }
  func.func @transform_4(%arg0: i32) -> (i32, i32) {
    %c0_i32 = arith.constant 0 : i32
    %c0_i32_0 = arith.constant 0 : i32
    %c0_i32_1 = arith.constant 0 : i32
    return %c0_i32, %c0_i32_0 : i32, i32
  }
  func.func @transform_5(%arg0: i32) -> (i32, i32) {
    %c0_i32 = arith.constant 0 : i32
    %c0_i32_0 = arith.constant 0 : i32
    %c0_i32_1 = arith.constant 0 : i32
    return %c0_i32, %c0_i32_0 : i32, i32
  }
  func.func @transform_6(%arg0: i32) -> (i32, i32) {
    %c0_i32 = arith.constant 0 : i32
    %c0_i32_0 = arith.constant 0 : i32
    %c0_i32_1 = arith.constant 0 : i32
    return %c0_i32, %c0_i32_0 : i32, i32
  }
  func.func @transform_7(%arg0: i32) -> (i32, i32, i32) {
    %c0_i32 = arith.constant 0 : i32
    %c0_i32_0 = arith.constant 0 : i32
    %c0_i32_1 = arith.constant 0 : i32
    return %arg0, %c0_i32, %c0_i32_0 : i32, i32, i32
  }
}

</mosaic_0001>

<bundles_post_ra>
// kernel: tpu_custom_call.1
= control target key start
LH: loop header
LB: loop body
LE: loop exit
PB: predicated region body
PF: predicated region fallthrough
CT: control target
= control target key end

     0   :  { %12 = vsyncpa [#allocation3], 0  ;;  %s1462_s0 = inlined_call_operand.hbm [shape: f32[1,8,512], index: 0, kind: input, shape index: {}]   ;;  %s1463_s1 = inlined_call_operand.vmem [shape: f32[8,1], index: 1, kind: input, shape index: {}]   ;;  %s1464_s2 = inlined_call_operand.vmem [shape: f32[8,1], index: 2, kind: input, shape index: {}]   ;;  %s1465_s3 = inlined_call_operand.vmem [shape: f32[8,72], index: 3, kind: input, shape index: {}]   ;;  %s1466_s4 = inlined_call_operand.vmem [shape: f32[8,1], index: 4, kind: input, shape index: {}]   ;;  %s1467_s5 = inlined_call_operand.vmem [shape: f32[8,72], index: 5, kind: input, shape index: {}]   ;;  %s1468_s6 = inlined_call_operand.hbm [shape: f32[9,512], index: 6, kind: input, shape index: {}]   ;;  %s1469_s7 = inlined_call_operand.hbm [shape: f32[1,8,512], index: 7, kind: output, shape index: {}]  }
   0x1   :  { %13 = vsyncpa [#allocation6], 0 }
   0x2   :  { %14 = vsyncpa [#allocation4], 0  ;;  %s896_s24 = smov [#allocation2]   ;;  %s897_s26 = smov [#allocation5]  }
   0x3   :  { %s21_s25 = sshll.u32 %s896_s24, 4  ;;  %s40_s27 = sshll.u32 %s897_s26, 4  ;;  %s22_s25 = int_to_ptr.vmem [resolvable:$true] %s21_s25  ;;  %s41_s27 = int_to_ptr.vmem [resolvable:$true] %s40_s27 }
   0x4   :  { %s838_s28 = scalar_lea.vmem %s22_s25, 512  ;;  %p843_p1 = scmp.lt.s32.totalorder %s22_s25, %s22_s25 }
   0x5   :  { %p839_p0 = scmp.ne.s32.totalorder %s22_s25, %s838_s28  ;;  %p844_p2 = scmp.lt.s32.totalorder %s838_s28, %s838_s28 }
   0x7   :  { %p845_p3 = por %p844_p2, %p843_p1 }
   0x9   :  { %p846_p4 = pnand %p845_p3, %p839_p0 }
   0xb   :  { %849 = shalt.err (!%p846_p4)
}
   0xc   :  { %24 = dma.hbm_to_vmem [thread:$0]  %s1462_s0, 512, %s22_s25, [#allocation3]  }
   0xd   :  { %s858_s8 = scalar_lea.vmem %s41_s27, 1024  ;;  %p863_p6 = scmp.lt.s32.totalorder %s41_s27, %s41_s27 }
   0xe   :  { %p859_p5 = scmp.ne.s32.totalorder %s41_s27, %s858_s8  ;;  %p864_p7 = scmp.lt.s32.totalorder %s858_s8, %s858_s8 }
  0x10   :  { %p865_p8 = por %p864_p7, %p863_p6 }
  0x12   :  { %p866_p9 = pnand %p865_p8, %p859_p5 }
  0x14   :  { %869 = shalt.err (!%p866_p9)
}
  0x15   :  { %s898_s9 = smov 512   ;;  %s899_s10 = smov 32  }
  0x16   :  { %46 = dma.hbm_to_vmem [thread:$0]  %s1468_s6, 1024, %s41_s27, [#allocation6], %s898_s9, %s898_s9, %s899_s10  }
  0x17   :  { %890 = dma.done.wait [#allocation3], 512  }
  0x18   :  { %891 = vsyncadd [#allocation3], 4294966784 }
  0x19   :  { %892 = dma.done.wait [#allocation6], 1024  }
  0x1a   :  { %893 = vsyncadd [#allocation6], 4294966272  ;;  %v900_v0 = vmov 0   ;;  %v57_v1 = vld [vmem:[%s1463_s1] sm:$0xff]  ;;  %v965_v5 = vld [vmem:[#allocation2 + $0x10] sm:$0xff]  ;;  %s901_s1 = smov 111   ;;  %v97_v23 = vlaneseq }
  0x1b   :  { %829 = vset.pattern.permute.xlu0 %v900_v0  ;;  %v67_v2 = vld [vmem:[%s1464_s2] sm:$0xff]  ;;  %v967_v6 = vld [vmem:[#allocation2 + $0x8] sm:$0xff]  ;;  %v972_v13 = vld [vmem:[#allocation2 + $0x18] sm:$0xff]  ;;  %s902_s2 = smov 112   ;;  %s903_s6 = smov 113   ;;  %v909_v21 = vmov 0.0  }
  0x1c   :  { %60 = vperm.xlu0 %829, %v57_v1   ;;  %v963_v4 = vld [vmem:[#allocation2] sm:$0xff]  ;;  %s904_s16 = smov 127   ;;  %s905_s17 = smov 1   ;;  %430 = vmatprep.mubr.f32.mxu0 %v909_v21  ;;  %v1052_v24 = vand.u32 127, %v97_v23  ;;  %v1055_v27 = vshrl.u32 %v97_v23, 7  ;;  %v1072_v39 = vld [vmem:[#allocation5 + $0x8] sm:$0xff] }
  0x1d   :  { %s906_s18 = smov 15   ;;  %s907_s19 = smov 16   ;;  %501 = vmatprep.mubr.f32.mxu1 %v909_v21  ;;  %v356_v22 = vld [vmem:[%s1466_s4] sm:$0xff]  ;;  %v1057_v28 = vld [vmem:[#allocation5 + $0x28] ss:$0 sm:$0xff]  ;;  %v1089_v49 = vld [vmem:[#allocation5 + $0x10] sm:$0xff] }
  0x1e   :  { %s908_s20 = smov 17   ;;  %vm330_vm0 = vcmp.lt.s32.totalorder %v1052_v24, 111  ;;  %v1059_v29 = vld [vmem:[#allocation5 + $0x20] ss:$0 sm:$0xff]  ;;  %v1067_v36 = vld [vmem:[#allocation5 + $0x38] ss:$0 sm:$0xff] }
  0x1f   :  { %v304_v37 = vsub.s32 7, %v1055_v27  ;;  %v1070_v38 = vld [vmem:[#allocation5] sm:$0xff]  ;;  %v1074_v40 = vld [vmem:[#allocation5 + $0x30] ss:$0 sm:$0xff]  ;;  %vm297_vm1 = vcmp.lt.s32.totalorder %v1052_v24, 112  ;;  %v1091_v50 = vld [vmem:[#allocation5 + $0x18] sm:$0xff] }
  0x20   :  { %70 = vperm.xlu0 %829, %v67_v2   ;;  %v271_v59 = vsub.s32 6, %v1055_v27  ;;  %vm264_vm2 = vcmp.lt.s32.totalorder %v1052_v24, 113  ;;  %vm231_vm3 = vcmp.lt.s32.totalorder %v1052_v24, 127  ;;  %vm198_vm4 = vcmp.lt.s32.totalorder %v1052_v24, 1  ;;  %s910_s25 = smov [#allocation7]  }
  0x21   :  { %v1083_v46 = vrot.slane %v1070_v38, %v304_v37  ;;  %v1086_v47 = vrot.slane %v1072_v39, %v304_v37  ;;  %v1098_v55 = vrot.slane %v1089_v49, %v304_v37  ;;  %v1103_v58 = vrot.slane %v1091_v50, %v304_v37  ;;  %s796_s26 = sshll.u32 %s910_s25, 4  ;;  %s797_s26 = int_to_ptr.vmem [resolvable:$true] %s796_s26 }
  0x22   :  { %v1114_v2 = vrot.slane %v1070_v38, %v271_v59  ;;  %vm165_vm5 = vcmp.lt.s32.totalorder %v1052_v24, 15  ;;  %vm132_vm6 = vcmp.lt.s32.totalorder %v1052_v24, 16  ;;  %vm99_vm7 = vcmp.lt.s32.totalorder %v1052_v24, 17  ;;  %p875_p11 = scmp.lt.s32.totalorder %s797_s26, %s797_s26 }
  0x23   :  { %vm362_vm8 = vcmask 588800  }
  0x97   :  { %v61_v3 = vpop.permute.xlu0 %60 }
  0x98   :  { %v63_v7 = vmul.f32 %v61_v3, %v963_v4  ;;  %v65_v8 = vmul.f32 %v61_v3, %v965_v5  ;;  %v64_v10 = vmul.f32 %v61_v3, %v967_v6  ;;  %v66_v17 = vmul.f32 %v61_v3, %v972_v13 }
  0x99   :  { %v1117_v3 = vrot.slane %v1072_v39, %v271_v59 }
  0x9b   :  { %v71_v9 = vpop.permute.xlu0 %70 }
  0x9c   :  { %v73_v11 = vadd.f32 %v71_v9, %v63_v7  ;;  %v75_v12 = vadd.f32 %v71_v9, %v65_v8  ;;  %v74_v14 = vadd.f32 %v71_v9, %v64_v10  ;;  %v76_v18 = vadd.f32 %v71_v9, %v66_v17 }
  0x9d   :  { %v1129_v17 = vrot.slane %v1091_v50, %v271_v59 }
  0x9e   :  { %v974_v15 = vmax.f32 %v73_v11, 0.0  ;;  %v976_v16 = vmax.f32 %v75_v12, 0.0  ;;  %v983_v19 = vmax.f32 %v74_v14, 0.0  ;;  %v989_v20 = vmax.f32 %v76_v18, 0.0 }
  0x9f   :  { %v1124_v11 = vrot.slane %v1089_v49, %v271_v59  ;;  %v238_v18 = vsub.s32 5, %v1055_v27 }
  0xa0   :  { %326 = vrot.lane.b32.xlu0 %v976_v16, %s901_s1  ;;  %322 = vrot.lane.b32.xlu1 %v974_v15, %s901_s1 }
  0xa4   :  { %289 = vrot.lane.b32.xlu0 %v974_v15, %s902_s2  ;;  %324 = vrot.lane.b32.xlu1 %v983_v19, %s901_s1 }
  0xa8   :  { %293 = vrot.lane.b32.xlu0 %v976_v16, %s902_s2  ;;  %328 = vrot.lane.b32.xlu1 %v989_v20, %s901_s1 }
  0xac   :  { %256 = vrot.lane.b32.xlu0 %v974_v15, %s903_s6  ;;  %291 = vrot.lane.b32.xlu1 %v983_v19, %s902_s2 }
  0xb0   :  { %260 = vrot.lane.b32.xlu0 %v976_v16, %s903_s6  ;;  %295 = vrot.lane.b32.xlu1 %v989_v20, %s902_s2 }
  0xb4   :  { %223 = vrot.lane.b32.xlu0 %v974_v15, %s904_s16  ;;  %258 = vrot.lane.b32.xlu1 %v983_v19, %s903_s6 }
  0xb8   :  { %227 = vrot.lane.b32.xlu0 %v976_v16, %s904_s16  ;;  %262 = vrot.lane.b32.xlu1 %v989_v20, %s903_s6 }
  0xbc   :  { %190 = vrot.lane.b32.xlu0 %v974_v15, %s905_s17  ;;  %225 = vrot.lane.b32.xlu1 %v983_v19, %s904_s16 }
  0xc0   :  { %194 = vrot.lane.b32.xlu0 %v976_v16, %s905_s17  ;;  %229 = vrot.lane.b32.xlu1 %v989_v20, %s904_s16 }
  0xc4   :  { %157 = vrot.lane.b32.xlu0 %v974_v15, %s906_s18  ;;  %192 = vrot.lane.b32.xlu1 %v983_v19, %s905_s17 }
  0xc8   :  { %161 = vrot.lane.b32.xlu0 %v976_v16, %s906_s18  ;;  %196 = vrot.lane.b32.xlu1 %v989_v20, %s905_s17 }
  0xcc   :  { %124 = vrot.lane.b32.xlu0 %v974_v15, %s907_s19  ;;  %159 = vrot.lane.b32.xlu1 %v983_v19, %s906_s18 }
  0xd0   :  { %128 = vrot.lane.b32.xlu0 %v976_v16, %s907_s19  ;;  %163 = vrot.lane.b32.xlu1 %v989_v20, %s906_s18 }
  0xd4   :  { %89 = vrot.lane.b32.xlu0 %v974_v15, %s908_s20  ;;  %126 = vrot.lane.b32.xlu1 %v983_v19, %s907_s19 }
  0xd8   :  { %93 = vrot.lane.b32.xlu0 %v976_v16, %s908_s20  ;;  %130 = vrot.lane.b32.xlu1 %v989_v20, %s907_s19 }
  0xdc   :  { %359 = vperm.xlu0 %829, %v356_v22   ;;  %91 = vrot.lane.b32.xlu1 %v983_v19, %s908_s20 }
  0xe0   :  { %95 = vrot.lane.b32.xlu1 %v989_v20, %s908_s20 }
 0x112   :  { %v327_v25 = vpop.permute.xlu0 %326  ;;  %v323_v26 = vpop.permute.xlu1 %322 }
 0x116   :  { %v290_v30 = vpop.permute.xlu0 %289  ;;  %v325_v31 = vpop.permute.xlu1 %324 }
 0x117   :  { %v333_v32 = vsel %vm330_vm0, %v323_v26, %v325_v31  ;;  %v332_v33 = vsel %vm330_vm0, %v325_v31, %v327_v25 }
 0x118   :  { %v352_v34 = vmul.f32 %v1057_v28, %v332_v33  ;;  %v351_v35 = vmul.f32 %v1059_v29, %v333_v32  ;;  %v1140_v32 = vrot.slane %v1070_v38, %v238_v18  ;;  %v1143_v33 = vrot.slane %v1072_v39, %v238_v18 }
 0x11a   :  { %v294_v41 = vpop.permute.xlu0 %293  ;;  %380 = vmatprep.subr.mxu0 %v352_v34  ;;  %v329_v42 = vpop.permute.xlu1 %328 }
 0x11b   :  { %v331_v43 = vsel %vm330_vm0, %v327_v25, %v329_v42  ;;  %381 = vmatpush1.msra.mxu0 %v351_v35  ;;  %v334_v44 = vsel %vm330_vm0, %v329_v42, %v323_v26  ;;  %v1150_v42 = vrot.slane %v1089_v49, %v238_v18 }
 0x11c   :  { %v354_v45 = vmul.f32 %v1067_v36, %v334_v44  ;;  %v353_v48 = vmul.f32 %v1074_v40, %v331_v43 }
 0x11e   :  { %v257_v51 = vpop.permute.xlu0 %256  ;;  %451 = vmatprep.subr.mxu1 %v354_v45  ;;  %v292_v52 = vpop.permute.xlu1 %291  ;;  %v1155_v45 = vrot.slane %v1091_v50, %v238_v18 }
 0x11f   :  { %v299_v53 = vsel %vm297_vm1, %v292_v52, %v294_v41  ;;  %v300_v54 = vsel %vm297_vm1, %v290_v30, %v292_v52  ;;  %452 = vmatpush1.msra.mxu1 %v353_v48  ;;  %v205_v48 = vsub.s32 3, %v1055_v27 }
 0x120   :  { %v318_v56 = vmul.f32 %v1083_v46, %v300_v54  ;;  %v319_v57 = vmul.f32 %v1086_v47, %v299_v53 }
 0x121   :  { %v1167_v59 = vrot.slane %v1072_v39, %v205_v48 }
 0x122   :  { %v261_v60 = vpop.permute.xlu0 %260  ;;  %382 = vmatprep.subr.mxu0 %v319_v57  ;;  %v296_v61 = vpop.permute.xlu1 %295 }
 0x123   :  { %v298_v62 = vsel %vm297_vm1, %v294_v41, %v296_v61  ;;  %v301_v63 = vsel %vm297_vm1, %v296_v61, %v290_v30  ;;  %383 = vmatpush1.msra.mxu0 %v318_v56 }
 0x124   :  { %v320_v0 = vmul.f32 %v1098_v55, %v298_v62  ;;  %v321_v1 = vmul.f32 %v1103_v58, %v301_v63 }
 0x126   :  { %v224_v7 = vpop.permute.xlu0 %223  ;;  %453 = vmatprep.subr.mxu1 %v321_v1  ;;  %v259_v8 = vpop.permute.xlu1 %258  ;;  %v172_v1 = vsub.s32 2, %v1055_v27 }
 0x127   :  { %v266_v9 = vsel %vm264_vm2, %v259_v8, %v261_v60  ;;  %v267_v10 = vsel %vm264_vm2, %v257_v51, %v259_v8  ;;  %454 = vmatpush1.msra.mxu1 %v320_v0  ;;  %v1178_v0 = vrot.slane %v1091_v50, %v205_v48 }
 0x128   :  { %v285_v12 = vmul.f32 %v1114_v2, %v267_v10  ;;  %v286_v14 = vmul.f32 %v1117_v3, %v266_v9 }
 0x12a   :  { %v228_v22 = vpop.permute.xlu0 %227  ;;  %384 = vmatprep.subr.mxu0 %v286_v14  ;;  %v263_v23 = vpop.permute.xlu1 %262 }
 0x12b   :  { %v265_v25 = vsel %vm264_vm2, %v261_v60, %v263_v23  ;;  %v268_v26 = vsel %vm264_vm2, %v263_v23, %v257_v51  ;;  %385 = vmatpush1.msra.mxu0 %v285_v12 }
 0x12c   :  { %v287_v30 = vmul.f32 %v1124_v11, %v265_v25  ;;  %v288_v31 = vmul.f32 %v1129_v17, %v268_v26 }
 0x12e   :  { %v191_v34 = vpop.permute.xlu0 %190  ;;  %455 = vmatprep.subr.mxu1 %v288_v31  ;;  %v226_v35 = vpop.permute.xlu1 %225  ;;  %v1205_v31 = vrot.slane %v1091_v50, %v172_v1 }
 0x12f   :  { %v233_v37 = vsel %vm231_vm3, %v226_v35, %v228_v22  ;;  %v234_v41 = vsel %vm231_vm3, %v224_v7, %v226_v35  ;;  %456 = vmatpush1.msra.mxu1 %v287_v30  ;;  %v1202_v30 = vrot.slane %v1070_v38, %v172_v1  ;;  %v1209_v35 = vrot.slane %v1089_v49, %v172_v1 }
 0x130   :  { %v252_v43 = vmul.f32 %v1140_v32, %v234_v41  ;;  %v253_v44 = vmul.f32 %v1143_v33, %v233_v37 }
 0x132   :  { %v195_v51 = vpop.permute.xlu0 %194  ;;  %386 = vmatprep.subr.mxu0 %v253_v44  ;;  %v230_v52 = vpop.permute.xlu1 %229 }
 0x133   :  { %v232_v53 = vsel %vm231_vm3, %v228_v22, %v230_v52  ;;  %v235_v54 = vsel %vm231_vm3, %v230_v52, %v224_v7  ;;  %387 = vmatpush1.msra.mxu0 %v252_v43 }
 0x134   :  { %v254_v56 = vmul.f32 %v1150_v42, %v232_v53  ;;  %v255_v57 = vmul.f32 %v1155_v45, %v235_v54  ;;  %388 = vmatprep.subr.mxu0 %v983_v19  ;;  %v1175_v19 = vrot.slane %v1070_v38, %v205_v48 }
 0x135   :  { %389 = vmatpush1.msra.mxu0 %v974_v15  ;;  %v1182_v15 = vrot.slane %v1089_v49, %v205_v48 }
 0x136   :  { %v158_v60 = vpop.permute.xlu0 %157  ;;  %457 = vmatprep.subr.mxu1 %v255_v57  ;;  %v193_v61 = vpop.permute.xlu1 %192 }
 0x137   :  { %v201_v62 = vsel %vm198_vm4, %v191_v34, %v193_v61  ;;  %458 = vmatpush1.msra.mxu1 %v254_v56  ;;  %v200_v7 = vsel %vm198_vm4, %v193_v61, %v195_v51 }
 0x138   :  { %v220_v63 = vmul.f32 %v1167_v59, %v201_v62  ;;  %459 = vmatprep.subr.mxu1 %v989_v20  ;;  %v221_v18 = vmul.f32 %v1182_v15, %v200_v7 }
 0x139   :  { %460 = vmatpush1.msra.mxu1 %v976_v16  ;;  %v1195_v16 = vrot.slane %v1072_v39, %v172_v1 }
 0x13a   :  { %v162_v8 = vpop.permute.xlu0 %161  ;;  %390 = vmatprep.subr.mxu0 %v220_v63  ;;  %v197_v9 = vpop.permute.xlu1 %196  ;;  %v106_v63 = vsub.s32 0, %v1055_v27 }
 0x13b   :  { %v199_v20 = vsel %vm198_vm4, %v195_v51, %v197_v9  ;;  %v202_v10 = vsel %vm198_vm4, %v197_v9, %v191_v34  ;;  %v139_v34 = vsub.s32 1, %v1055_v27 }
 0x13c   :  { %v219_v12 = vmul.f32 %v1175_v19, %v202_v10  ;;  %v222_v14 = vmul.f32 %v1178_v0, %v199_v20  ;;  %v1247_v27 = vrot.slane %v1072_v39, %v106_v63 }
 0x13d   :  { %v1221_v52 = vrot.slane %v1072_v39, %v139_v34  ;;  %v1228_v61 = vrot.slane %v1070_v38, %v139_v34  ;;  %v1231_v62 = vrot.slane %v1091_v50, %v139_v34  ;;  %v1235_v1 = vrot.slane %v1089_v49, %v139_v34 }
 0x13e   :  { %391 = vmatpush1.msra.mxu0 %v219_v12  ;;  %461 = vmatprep.subr.mxu1 %v222_v14  ;;  %v160_v22 = vpop.permute.xlu1 %159  ;;  %v125_v23 = vpop.permute.xlu0 %124  ;;  %v1257_v34 = vrot.slane %v1091_v50, %v106_v63  ;;  %v1260_v39 = vrot.slane %v1089_v49, %v106_v63  ;;  %v355_v49 = vld [vmem:[%s1465_s3] sm:$0xff] }
 0x13f   :  { %v168_v25 = vsel %vm165_vm5, %v158_v60, %v160_v22  ;;  %462 = vmatpush1.msra.mxu1 %v221_v18  ;;  %v167_v37 = vsel %vm165_vm5, %v160_v22, %v162_v8 }
 0x140   :  { %v187_v26 = vmul.f32 %v1195_v16, %v168_v25  ;;  %v188_v53 = vmul.f32 %v1209_v35, %v167_v37 }
 0x142   :  { %392 = vmatprep.subr.mxu0 %v187_v26  ;;  %v164_v41 = vpop.permute.xlu1 %163  ;;  %v129_v54 = vpop.permute.xlu0 %128  ;;  %v1254_v26 = vrot.slane %v1070_v38, %v106_v63 }
 0x143   :  { %v166_v43 = vsel %vm165_vm5, %v162_v8, %v164_v41  ;;  %v169_v44 = vsel %vm165_vm5, %v164_v41, %v158_v60 }
 0x144   :  { %v186_v48 = vmul.f32 %v1202_v30, %v169_v44  ;;  %v189_v51 = vmul.f32 %v1205_v31, %v166_v43 }
 0x146   :  { %393 = vmatpush1.msra.mxu0 %v186_v48  ;;  %463 = vmatprep.subr.mxu1 %v189_v51  ;;  %v127_v56 = vpop.permute.xlu1 %126  ;;  %v90_v9 = vpop.permute.xlu0 %89 }
 0x147   :  { %v135_v57 = vsel %vm132_vm6, %v125_v23, %v127_v56  ;;  %464 = vmatpush1.msra.mxu1 %v188_v53  ;;  %v134_v7 = vsel %vm132_vm6, %v127_v56, %v129_v54 }
 0x148   :  { %v154_v60 = vmul.f32 %v1221_v52, %v135_v57  ;;  %v155_v18 = vmul.f32 %v1235_v1, %v134_v7 }
 0x14a   :  { %394 = vmatprep.subr.mxu0 %v154_v60  ;;  %v131_v8 = vpop.permute.xlu1 %130  ;;  %v94_v37 = vpop.permute.xlu0 %93 }
 0x14b   :  { %v133_v20 = vsel %vm132_vm6, %v129_v54, %v131_v8  ;;  %v136_v10 = vsel %vm132_vm6, %v131_v8, %v125_v23 }
 0x14c   :  { %v153_v12 = vmul.f32 %v1228_v61, %v136_v10  ;;  %v156_v14 = vmul.f32 %v1231_v62, %v133_v20 }
 0x14e   :  { %395 = vmatpush1.msra.mxu0 %v153_v12  ;;  %465 = vmatprep.subr.mxu1 %v156_v14  ;;  %v92_v22 = vpop.permute.xlu1 %91 }
 0x14f   :  { %v102_v25 = vsel %vm99_vm7, %v90_v9, %v92_v22  ;;  %466 = vmatpush1.msra.mxu1 %v155_v18  ;;  %v101_v41 = vsel %vm99_vm7, %v92_v22, %v94_v37 }
 0x150   :  { %v121_v23 = vmul.f32 %v1247_v27, %v102_v25  ;;  %v122_v51 = vmul.f32 %v1260_v39, %v101_v41 }
 0x152   :  { %396 = vmatprep.subr.mxu0 %v121_v23  ;;  %v96_v43 = vpop.permute.xlu1 %95 }
 0x153   :  { %v100_v44 = vsel %vm99_vm7, %v94_v37, %v96_v43  ;;  %v103_v48 = vsel %vm99_vm7, %v96_v43, %v90_v9 }
 0x154   :  { %v120_v38 = vmul.f32 %v1254_v26, %v103_v48  ;;  %v123_v50 = vmul.f32 %v1257_v34, %v100_v44 }
 0x156   :  { %397 = vmatpush1.msra.mxu0 %v120_v38  ;;  %467 = vmatprep.subr.mxu1 %v123_v50 }
 0x157   :  { %810 = vmatmul.mubr.msk.f32.vlgmr.msra.gmra.mxu0 %vm362_vm8, %v355_v49  ;;  %468 = vmatpush1.msra.mxu1 %v122_v51  ;;  %v360_v53 = vpop.permute.xlu0 %359 }
 0x158   :  { %811 = vmatmul.mubr.msk.f32.vlgmr.msra.gmra.mxu1 %vm362_vm8, %v355_v49  ;;  %708 = vmatprep.mubr.f32.mxu0 %v909_v21 }
 0x159   :  { %779 = vmatprep.mubr.f32.mxu1 %v909_v21 }
 0x217   :  { %v432_v54 = vpop.f32.mrf.mxu0 }
 0x218   :  { %v433_v56 = vadd.f32 %v432_v54, %v360_v53  ;;  %v503_v57 = vpop.f32.mrf.mxu1 }
 0x219   :  { %v434_v60 = vpop.f32.mrf.mxu0  ;;  %v504_v7 = vadd.f32 %v503_v57, %v360_v53 }
 0x21a   :  { %v1278_v63 = vmax.f32 %v433_v56, 0.0  ;;  %v435_v8 = vadd.f32 %v434_v60, %v360_v53  ;;  %v505_v9 = vpop.f32.mrf.mxu1 }
 0x21b   :  { %v506_v10 = vadd.f32 %v505_v9, %v360_v53  ;;  %v1284_v12 = vmax.f32 %v504_v7, 0.0 }
 0x21c   :  { %v1280_v20 = vmax.f32 %v435_v8, 0.0  ;;  %624 = vrot.lane.b32.xlu1 %v1278_v63, %s901_s1 }
 0x21d   :  { %v1288_v21 = vmax.f32 %v506_v10, 0.0 }
 0x21e   :  { %626 = vrot.lane.b32.xlu0 %v1280_v20, %s901_s1 }
 0x220   :  { %628 = vrot.lane.b32.xlu1 %v1284_v12, %s901_s1 }
 0x222   :  { %630 = vrot.lane.b32.xlu0 %v1288_v21, %s901_s1 }
 0x224   :  { %608 = vrot.lane.b32.xlu1 %v1278_v63, %s902_s2 }
 0x226   :  { %610 = vrot.lane.b32.xlu0 %v1280_v20, %s902_s2 }
 0x228   :  { %612 = vrot.lane.b32.xlu1 %v1284_v12, %s902_s2 }
 0x22a   :  { %614 = vrot.lane.b32.xlu0 %v1288_v21, %s902_s2 }
 0x22c   :  { %592 = vrot.lane.b32.xlu1 %v1278_v63, %s903_s6 }
 0x22e   :  { %594 = vrot.lane.b32.xlu0 %v1280_v20, %s903_s6 }
 0x230   :  { %596 = vrot.lane.b32.xlu1 %v1284_v12, %s903_s6 }
 0x232   :  { %598 = vrot.lane.b32.xlu0 %v1288_v21, %s903_s6 }
 0x234   :  { %576 = vrot.lane.b32.xlu1 %v1278_v63, %s904_s16 }
 0x236   :  { %578 = vrot.lane.b32.xlu0 %v1280_v20, %s904_s16 }
 0x238   :  { %580 = vrot.lane.b32.xlu1 %v1284_v12, %s904_s16 }
 0x23a   :  { %582 = vrot.lane.b32.xlu0 %v1288_v21, %s904_s16 }
 0x23c   :  { %560 = vrot.lane.b32.xlu1 %v1278_v63, %s905_s17 }
 0x23e   :  { %562 = vrot.lane.b32.xlu0 %v1280_v20, %s905_s17 }
 0x240   :  { %564 = vrot.lane.b32.xlu1 %v1284_v12, %s905_s17 }
 0x242   :  { %566 = vrot.lane.b32.xlu0 %v1288_v21, %s905_s17 }
 0x244   :  { %544 = vrot.lane.b32.xlu1 %v1278_v63, %s906_s18 }
 0x246   :  { %546 = vrot.lane.b32.xlu0 %v1280_v20, %s906_s18 }
 0x248   :  { %548 = vrot.lane.b32.xlu1 %v1284_v12, %s906_s18 }
 0x24a   :  { %550 = vrot.lane.b32.xlu0 %v1288_v21, %s906_s18 }
 0x24c   :  { %528 = vrot.lane.b32.xlu1 %v1278_v63, %s907_s19 }
 0x24e   :  { %530 = vrot.lane.b32.xlu0 %v1280_v20, %s907_s19 }
 0x250   :  { %532 = vrot.lane.b32.xlu1 %v1284_v12, %s907_s19 }
 0x252   :  { %534 = vrot.lane.b32.xlu0 %v1288_v21, %s907_s19 }
 0x254   :  { %512 = vrot.lane.b32.xlu1 %v1278_v63, %s908_s20 }
 0x256   :  { %514 = vrot.lane.b32.xlu0 %v1280_v20, %s908_s20 }
 0x258   :  { %516 = vrot.lane.b32.xlu1 %v1284_v12, %s908_s20 }
 0x25a   :  { %518 = vrot.lane.b32.xlu0 %v1288_v21, %s908_s20 }
 0x28e   :  { %v625_v14 = vpop.permute.xlu1 %624 }
 0x290   :  { %v627_v18 = vpop.permute.xlu0 %626 }
 0x291   :  { %v634_v22 = vsel %vm330_vm0, %v625_v14, %v627_v18 }
 0x292   :  { %v629_v25 = vpop.permute.xlu1 %628  ;;  %v636_v43 = vmul.f32 %v1059_v29, %v634_v22 }
 0x293   :  { %v633_v23 = vsel %vm330_vm0, %v627_v18, %v629_v25 }
 0x294   :  { %v637_v37 = vmul.f32 %v1057_v28, %v633_v23  ;;  %v631_v41 = vpop.permute.xlu0 %630 }
 0x295   :  { %v632_v44 = vsel %vm330_vm0, %v629_v25, %v631_v41  ;;  %v635_v48 = vsel %vm330_vm0, %v631_v41, %v625_v14 }
 0x296   :  { %v638_v38 = vmul.f32 %v1074_v40, %v632_v44  ;;  %v639_v50 = vmul.f32 %v1067_v36, %v635_v48  ;;  %658 = vmatprep.subr.mxu0 %v637_v37  ;;  %v609_v49 = vpop.permute.xlu1 %608 }
 0x297   :  { %659 = vmatpush1.msra.mxu0 %v636_v43 }
 0x298   :  { %729 = vmatprep.subr.mxu1 %v639_v50  ;;  %v611_v51 = vpop.permute.xlu0 %610 }
 0x299   :  { %730 = vmatpush1.msra.mxu1 %v638_v38  ;;  %v618_v28 = vsel %vm297_vm1, %v609_v49, %v611_v51 }
 0x29a   :  { %v613_v29 = vpop.permute.xlu1 %612  ;;  %v620_v40 = vmul.f32 %v618_v28, %v1083_v46 }
 0x29b   :  { %v617_v53 = vsel %vm297_vm1, %v611_v51, %v613_v29 }
 0x29c   :  { %v621_v54 = vmul.f32 %v617_v53, %v1086_v47  ;;  %v615_v56 = vpop.permute.xlu0 %614 }
 0x29d   :  { %v616_v36 = vsel %vm297_vm1, %v613_v29, %v615_v56  ;;  %v619_v57 = vsel %vm297_vm1, %v615_v56, %v609_v49 }
 0x29e   :  { %v622_v60 = vmul.f32 %v616_v36, %v1098_v55  ;;  %v623_v7 = vmul.f32 %v619_v57, %v1103_v58  ;;  %660 = vmatprep.subr.mxu0 %v621_v54  ;;  %v593_v8 = vpop.permute.xlu1 %592 }
 0x29f   :  { %661 = vmatpush1.msra.mxu0 %v620_v40 }
 0x2a0   :  { %v595_v9 = vpop.permute.xlu0 %594  ;;  %731 = vmatprep.subr.mxu1 %v623_v7 }
 0x2a1   :  { %732 = vmatpush1.msra.mxu1 %v622_v60  ;;  %v602_v47 = vsel %vm264_vm2, %v593_v8, %v595_v9 }
 0x2a2   :  { %v597_v46 = vpop.permute.xlu1 %596  ;;  %v604_v55 = vmul.f32 %v602_v47, %v1114_v2 }
 0x2a3   :  { %v601_v10 = vsel %vm264_vm2, %v595_v9, %v597_v46 }
 0x2a4   :  { %v605_v14 = vmul.f32 %v601_v10, %v1117_v3  ;;  %v599_v18 = vpop.permute.xlu0 %598 }
 0x2a5   :  { %v600_v58 = vsel %vm264_vm2, %v597_v46, %v599_v18  ;;  %v603_v22 = vsel %vm264_vm2, %v599_v18, %v593_v8 }
 0x2a6   :  { %v606_v25 = vmul.f32 %v600_v58, %v1124_v11  ;;  %v607_v23 = vmul.f32 %v603_v22, %v1129_v17  ;;  %662 = vmatprep.subr.mxu0 %v605_v14  ;;  %v577_v37 = vpop.permute.xlu1 %576 }
 0x2a7   :  { %663 = vmatpush1.msra.mxu0 %v604_v55 }
 0x2a8   :  { %v579_v41 = vpop.permute.xlu0 %578  ;;  %733 = vmatprep.subr.mxu1 %v607_v23 }
 0x2a9   :  { %734 = vmatpush1.msra.mxu1 %v606_v25  ;;  %v586_v3 = vsel %vm231_vm3, %v577_v37, %v579_v41 }
 0x2aa   :  { %v581_v2 = vpop.permute.xlu1 %580  ;;  %v588_v11 = vmul.f32 %v586_v3, %v1140_v32 }
 0x2ab   :  { %v585_v43 = vsel %vm231_vm3, %v579_v41, %v581_v2 }
 0x2ac   :  { %v589_v44 = vmul.f32 %v585_v43, %v1143_v33  ;;  %v583_v48 = vpop.permute.xlu0 %582 }
 0x2ad   :  { %v584_v17 = vsel %vm231_vm3, %v581_v2, %v583_v48  ;;  %v587_v38 = vsel %vm231_vm3, %v583_v48, %v577_v37 }
 0x2ae   :  { %v590_v50 = vmul.f32 %v584_v17, %v1150_v42  ;;  %v591_v49 = vmul.f32 %v587_v38, %v1155_v45  ;;  %664 = vmatprep.subr.mxu0 %v589_v44  ;;  %v561_v51 = vpop.permute.xlu1 %560 }
 0x2af   :  { %665 = vmatpush1.msra.mxu0 %v588_v11 }
 0x2b0   :  { %v563_v28 = vpop.permute.xlu0 %562  ;;  %666 = vmatprep.subr.mxu0 %v1280_v20  ;;  %735 = vmatprep.subr.mxu1 %v591_v49 }
 0x2b1   :  { %v570_v32 = vsel %vm198_vm4, %v561_v51, %v563_v28  ;;  %667 = vmatpush1.msra.mxu0 %v1278_v63  ;;  %736 = vmatpush1.msra.mxu1 %v590_v50 }
 0x2b2   :  { %v573_v33 = vmul.f32 %v570_v32, %v1167_v59  ;;  %737 = vmatprep.subr.mxu1 %v1288_v21  ;;  %v565_v42 = vpop.permute.xlu1 %564 }
 0x2b3   :  { %738 = vmatpush1.msra.mxu1 %v1284_v12  ;;  %v569_v45 = vsel %vm198_vm4, %v563_v28, %v565_v42 }
 0x2b4   :  { %v567_v29 = vpop.permute.xlu0 %566  ;;  %668 = vmatprep.subr.mxu0 %v573_v33  ;;  %v574_v21 = vmul.f32 %v569_v45, %v1182_v15 }
 0x2b5   :  { %v568_v20 = vsel %vm198_vm4, %v565_v42, %v567_v29  ;;  %v571_v53 = vsel %vm198_vm4, %v567_v29, %v561_v51 }
 0x2b6   :  { %v572_v63 = vmul.f32 %v571_v53, %v1175_v19  ;;  %v575_v59 = vmul.f32 %v568_v20, %v1178_v0  ;;  %v545_v54 = vpop.permute.xlu1 %544 }
 0x2b8   :  { %v547_v56 = vpop.permute.xlu0 %546  ;;  %669 = vmatpush1.msra.mxu0 %v572_v63  ;;  %739 = vmatprep.subr.mxu1 %v575_v59 }
 0x2b9   :  { %v554_v12 = vsel %vm165_vm5, %v545_v54, %v547_v56  ;;  %740 = vmatpush1.msra.mxu1 %v574_v21 }
 0x2ba   :  { %v557_v40 = vmul.f32 %v554_v12, %v1195_v16  ;;  %v549_v36 = vpop.permute.xlu1 %548 }
 0x2bb   :  { %v553_v57 = vsel %vm165_vm5, %v547_v56, %v549_v36 }
 0x2bc   :  { %v551_v60 = vpop.permute.xlu0 %550  ;;  %670 = vmatprep.subr.mxu0 %v557_v40  ;;  %v558_v9 = vmul.f32 %v553_v57, %v1209_v35 }
 0x2bd   :  { %v552_v19 = vsel %vm165_vm5, %v549_v36, %v551_v60  ;;  %v555_v0 = vsel %vm165_vm5, %v551_v60, %v545_v54 }
 0x2be   :  { %v556_v15 = vmul.f32 %v555_v0, %v1202_v30  ;;  %v559_v7 = vmul.f32 %v552_v19, %v1205_v31  ;;  %v529_v8 = vpop.permute.xlu1 %528 }
 0x2c0   :  { %v531_v16 = vpop.permute.xlu0 %530  ;;  %671 = vmatpush1.msra.mxu0 %v556_v15  ;;  %741 = vmatprep.subr.mxu1 %v559_v7 }
 0x2c1   :  { %v538_v47 = vsel %vm132_vm6, %v529_v8, %v531_v16  ;;  %742 = vmatpush1.msra.mxu1 %v558_v9 }
 0x2c2   :  { %v541_v46 = vmul.f32 %v538_v47, %v1221_v52  ;;  %v533_v10 = vpop.permute.xlu1 %532 }
 0x2c3   :  { %v537_v14 = vsel %vm132_vm6, %v531_v16, %v533_v10 }
 0x2c4   :  { %v535_v18 = vpop.permute.xlu0 %534  ;;  %672 = vmatprep.subr.mxu0 %v541_v46  ;;  %v542_v22 = vmul.f32 %v537_v14, %v1235_v1 }
 0x2c5   :  { %v536_v30 = vsel %vm132_vm6, %v533_v10, %v535_v18  ;;  %v539_v31 = vsel %vm132_vm6, %v535_v18, %v529_v8 }
 0x2c6   :  { %v540_v35 = vmul.f32 %v539_v31, %v1228_v61  ;;  %v543_v55 = vmul.f32 %v536_v30, %v1231_v62  ;;  %v513_v58 = vpop.permute.xlu1 %512 }
 0x2c8   :  { %v515_v52 = vpop.permute.xlu0 %514  ;;  %673 = vmatpush1.msra.mxu0 %v540_v35  ;;  %743 = vmatprep.subr.mxu1 %v543_v55 }
 0x2c9   :  { %v522_v25 = vsel %vm99_vm7, %v513_v58, %v515_v52  ;;  %744 = vmatpush1.msra.mxu1 %v542_v22 }
 0x2ca   :  { %v525_v23 = vmul.f32 %v522_v25, %v1247_v27  ;;  %v517_v37 = vpop.permute.xlu1 %516  ;;  %v640_v27 = vld [vmem:[%s1467_s5] sm:$0xff]  ;;  %s870_s5 = scalar_lea.vmem %s797_s26, 512 }
 0x2cb   :  { %v521_v41 = vsel %vm99_vm7, %v515_v52, %v517_v37  ;;  %p871_p10 = scmp.ne.s32.totalorder %s797_s26, %s870_s5  ;;  %p876_p12 = scmp.lt.s32.totalorder %s870_s5, %s870_s5 }
 0x2cc   :  { %v519_v3 = vpop.permute.xlu0 %518  ;;  %674 = vmatprep.subr.mxu0 %v525_v23  ;;  %v526_v43 = vmul.f32 %v521_v41, %v1260_v39 }
 0x2cd   :  { %v520_v61 = vsel %vm99_vm7, %v517_v37, %v519_v3  ;;  %v523_v62 = vsel %vm99_vm7, %v519_v3, %v513_v58  ;;  %p877_p13 = por %p876_p12, %p875_p11 }
 0x2ce   :  { %v524_v1 = vmul.f32 %v523_v62, %v1254_v26  ;;  %v527_v2 = vmul.f32 %v520_v61, %v1257_v34 }
 0x2cf   :  { %p878_p0 = pnand %p877_p13, %p871_p10 }
 0x2d0   :  { %675 = vmatpush1.msra.mxu0 %v524_v1  ;;  %745 = vmatprep.subr.mxu1 %v527_v2 }
 0x2d1   :  { %812 = vmatmul.mubr.msk.f32.vlgmr.msra.gmra.mxu0 %vm362_vm8, %v640_v27  ;;  %746 = vmatpush1.msra.mxu1 %v526_v43 }
 0x2d2   :  { %813 = vmatmul.mubr.msk.f32.vlgmr.msra.gmra.mxu1 %vm362_vm8, %v640_v27 }
 0x391   :  { %v710_v44 = vpop.f32.mrf.mxu0 }
 0x392   :  { %v711_v24 = vadd.f32 %v710_v44, %v963_v4  ;;  %v781_v48 = vpop.f32.mrf.mxu1 }
 0x393   :  { %v782_v26 = vadd.f32 %v781_v48, %v965_v5  ;;  %v712_v34 = vpop.f32.mrf.mxu0 }
 0x394   :  { %786 = vst [vmem:[#allocation7] sm:$0xff] %v711_v24  ;;  %v713_v11 = vadd.f32 %v712_v34, %v967_v6  ;;  %v783_v39 = vpop.f32.mrf.mxu1 }
 0x395   :  { %788 = vst [vmem:[#allocation7 + $0x10] sm:$0xff] %v782_v26  ;;  %v784_v17 = vadd.f32 %v783_v39, %v972_v13 }
 0x396   :  { %787 = vst [vmem:[#allocation7 + $0x8] sm:$0xff] %v713_v11 }
 0x397   :  { %789 = vst [vmem:[#allocation7 + $0x18] sm:$0xff] %v784_v17 }
 0x398   :  { %881 = shalt.err (!%p878_p0)
}
 0x399   :  { %799 = dma.vmem_to_hbm [thread:$0]  %s797_s26, 512, %s1469_s7, [#allocation4]  }
 0x39a   :  { %894 = dma.done.wait [#allocation4], 512  }
 0x39b   :  { %895 = vsyncadd [#allocation4], 4294966784 }
 0x39c   :  { %803 = vsyncpa [#allocation3], 1 }
 0x39d   :  { %804 = vsyncpa [#allocation6], 1 }
 0x39e   :  { %805 = vsyncpa [#allocation4], 1 }

</bundles_post_ra>
